<compile_context>
chip_gen: v7x
topology: tpu7x:2x2x1
jax: 0.10.0
libtpu: 0.0.40
codegen_flags: <defaults>
</compile_context>

<pallas_src>
import math
import jax
import jax.numpy as jnp
from jax import lax
from jax.experimental import pallas as pl
from jax.experimental.pallas import tpu as pltpu


def generator_kernel(x_ref, w_ref, b_ref, o_ref):
    # x_ref: (tm, D), w_ref: (tn, D) in PyTorch layout, b_ref: (1, tn).
    # Contract on the last dim of both operands (x @ w.T) on the MXU,
    # accumulate in f32, add bias on the VPU.
    acc = lax.dot_general(
        x_ref[...], w_ref[...],
        dimension_numbers=(((1,), (1,)), ((), ())),
        preferred_element_type=jnp.float32,
    )
    o_ref[...] = (acc + b_ref[...]).astype(o_ref.dtype)


def _round_up(a, m):
    return ((a + m - 1) // m) * m


def generator_forward(x, weight, bias, *, tm=256, tn=512,
                      vmem_budget_bytes=28 * 1024 * 1024):
    """x: [B, S, D]; weight: [V, D] (PyTorch layout); bias: [V] -> [B, S, V]."""
    B, S, D = x.shape
    V = weight.shape[0]
    M = B * S
    itemsize = jnp.dtype(x.dtype).itemsize

    # Clamp tiles to the problem size (sublane multiple of 8, lane multiple of 128).
    tm = min(tm, _round_up(M, 8))
    tn = min(tn, _round_up(V, 128))

    # Shrink tiles until the double-buffered working set fits a v7x-safe budget
    # (64 MiB physical / 32 MiB scoped default on v7x).
    def vmem_bytes(tm_, tn_):
        return 2 * (tm_ * D + tn_ * D + tn_ + tm_ * tn_) * 4  # f32 blocks, 2 buffers

    while vmem_bytes(tm, tn) > vmem_budget_bytes and tn > 128:
        tn = max(128, tn // 2)
    while vmem_bytes(tm, tn) > vmem_budget_bytes and tm > 8:
        tm = max(8, tm // 2)
    # TODO(synk): if D is so large that a single (tn, D) weight block exceeds the
    # budget, a K (D) grid axis with an f32 VMEM accumulator would be needed.

    M_pad = _round_up(M, tm)
    V_pad = _round_up(V, tn)

    x2 = x.reshape(M, D)
    if M_pad != M:
        x2 = jnp.pad(x2, ((0, M_pad - M), (0, 0)))
    w = weight                      # keep [V, D]: no HBM transpose copy
    b2 = bias.reshape(1, V)         # 2-D for lane-dense layout
    if V_pad != V:
        w = jnp.pad(w, ((0, V_pad - V), (0, 0)))
        b2 = jnp.pad(b2, ((0, 0), (0, V_pad - V)))

    # Grid: V tiles outer, M tiles inner -> the weight tile (index depends only
    # on j) is held resident in VMEM across all M tiles; only x is re-streamed.
    grid = (V_pad // tn, M_pad // tm)

    cost = pl.CostEstimate(
        flops=2 * M_pad * D * V_pad,
        transcendentals=0,
        bytes_accessed=(M_pad * D + V_pad * D + V_pad + M_pad * V_pad) * itemsize,
    )

    vmem_limit = min(48 * 1024 * 1024,
                     max(32 * 1024 * 1024, 2 * vmem_bytes(tm, tn)))

    out = pl.pallas_call(
        generator_kernel,
        out_shape=jax.ShapeDtypeStruct((M_pad, V_pad), x.dtype),
        grid_spec=pltpu.PrefetchScalarGridSpec(
            num_scalar_prefetch=0,
            grid=grid,
            in_specs=[
                pl.BlockSpec((tm, D), lambda j, i: (i, 0)),   # activations (streamed)
                pl.BlockSpec((tn, D), lambda j, i: (j, 0)),   # weight (resident over i)
                pl.BlockSpec((1, tn), lambda j, i: (0, j)),   # bias
            ],
            out_specs=pl.BlockSpec((tm, tn), lambda j, i: (i, j)),
        ),
        compiler_params=pltpu.CompilerParams(
            dimension_semantics=("parallel", "parallel"),
            vmem_limit_bytes=vmem_limit,
        ),
        cost_estimate=cost,
    )(x2, w, b2)

    if M_pad != M or V_pad != V:
        out = out[:M, :V]
    return out.reshape(B, S, V)


def init_linear_params(key, n_vocab, d_model, dtype=jnp.float32):
    # Deterministic init mirroring nn.Linear defaults:
    # weight, bias ~ U(-1/sqrt(d_model), 1/sqrt(d_model))
    kw, kb = jax.random.split(key)
    bound = 1.0 / math.sqrt(d_model)
    weight = jax.random.uniform(kw, (n_vocab, d_model), dtype,
                                minval=-bound, maxval=bound)
    bias = jax.random.uniform(kb, (n_vocab,), dtype,
                              minval=-bound, maxval=bound)
    return weight, bias


if __name__ == "__main__":
    # Small, shape-aligned case.
    B, S, d_model, n_vocab = 2, 8, 32, 128
    key = jax.random.PRNGKey(0)
    kx, kp = jax.random.split(key)
    x = jax.random.normal(kx, (B, S, d_model), jnp.float32)
    weight, bias = init_linear_params(kp, n_vocab, d_model)

    out = jax.block_until_ready(generator_forward(x, weight, bias))
    ref = jnp.einsum("bsd,vd->bsv", x, weight) + bias
    assert out.shape == (B, S, n_vocab)
    assert jnp.allclose(out, ref, atol=1e-5, rtol=1e-5)

    # Ragged case exercising the edge-padding path (non-multiple M and V).
    B2, S2, V2 = 1, 5, 100
    x2 = jax.random.normal(kx, (B2, S2, d_model), jnp.float32)
    w2, b2 = init_linear_params(kp, V2, d_model)
    out2 = jax.block_until_ready(generator_forward(x2, w2, b2))
    ref2 = jnp.einsum("bsd,vd->bsv", x2, w2) + b2
    assert out2.shape == (B2, S2, V2)
    assert jnp.allclose(out2, ref2, atol=1e-5, rtol=1e-5)

    print("KERNEL_OK")
</pallas_src>

<mosaic_0001>
module attributes {stable_mosaic.version = 11 : i64} {
  func.func @generator_kernel(%arg0: i32, %arg1: i32, %arg2: memref<16x32xf32, #tpu.memory_space<vmem>>, %arg3: memref<128x32xf32, #tpu.memory_space<vmem>>, %arg4: memref<1x128xf32, #tpu.memory_space<vmem>>, %arg5: memref<16x128xf32, #tpu.memory_space<vmem>>) attributes {dimension_semantics = [#tpu.dimension_semantics<parallel>, #tpu.dimension_semantics<parallel>], iteration_bounds = array<i64: 1, 1>, scalar_prefetch = 0 : i64, scratch_operands = 0 : i64, tpu.core_type = #tpu.core_type<tc>, window_params = [{transform_indices = @transform_0, window_bounds = array<i64: 16, 32>}, {transform_indices = @transform_1, window_bounds = array<i64: 128, 32>}, {transform_indices = @transform_2, window_bounds = array<i64: 1, 128>}, {transform_indices = @transform_3, window_bounds = array<i64: 16, 128>}]} {
    %c0 = arith.constant 0 : index
    %c0_0 = arith.constant 0 : index
    %0 = vector.load %arg2[%c0, %c0_0] : memref<16x32xf32, #tpu.memory_space<vmem>>, vector<16x32xf32>
    %c0_1 = arith.constant 0 : index
    %c0_2 = arith.constant 0 : index
    %1 = vector.load %arg3[%c0_1, %c0_2] : memref<128x32xf32, #tpu.memory_space<vmem>>, vector<128x32xf32>
    %cst = arith.constant dense<0.000000e+00> : vector<16x128xf32>
    %2 = tpu.matmul %0, %1, %cst {dimension_numbers = #tpu.dot_dimension_numbers<[1], [1], [0], [0], [0, 0, 1, 0], [], []>} : vector<16x32xf32>, vector<128x32xf32>, vector<16x128xf32> -> vector<16x128xf32>
    %c0_3 = arith.constant 0 : index
    %c0_4 = arith.constant 0 : index
    %3 = vector.load %arg4[%c0_3, %c0_4] : memref<1x128xf32, #tpu.memory_space<vmem>>, vector<1x128xf32>
    %4 = vector.broadcast %3 : vector<1x128xf32> to vector<16x128xf32>
    %5 = arith.addf %2, %4 : vector<16x128xf32>
    %c0_5 = arith.constant 0 : index
    %c0_6 = arith.constant 0 : index
    %6 = vector.load %arg5[%c0_5, %c0_6] : memref<16x128xf32, #tpu.memory_space<vmem>>, vector<16x128xf32>
    tpu.vector_store %arg5[%c0_5, %c0_6], %5 {strides = array<i32>} : memref<16x128xf32, #tpu.memory_space<vmem>>, vector<16x128xf32>,
    return
  }
  func.func @transform_0(%arg0: i32, %arg1: i32) -> (i32, i32) {
    %c0_i32 = arith.constant 0 : i32
    %c0_i32_0 = arith.constant 0 : i32
    return %arg1, %c0_i32 : i32, i32
  }
  func.func @transform_1(%arg0: i32, %arg1: i32) -> (i32, i32) {
    %c0_i32 = arith.constant 0 : i32
    %c0_i32_0 = arith.constant 0 : i32
    return %arg0, %c0_i32 : i32, i32
  }
  func.func @transform_2(%arg0: i32, %arg1: i32) -> (i32, i32) {
    %c0_i32 = arith.constant 0 : i32
    %c0_i32_0 = arith.constant 0 : i32
    return %c0_i32, %arg0 : i32, i32
  }
  func.func @transform_3(%arg0: i32, %arg1: i32) -> (i32, i32) {
    %c0_i32 = arith.constant 0 : i32
    return %arg1, %arg0 : i32, i32
  }
}

</mosaic_0001>

<bundles_post_ra>
// kernel: tpu_custom_call.1
= control target key start
LH: loop header
LB: loop body
LE: loop exit
PB: predicated region body
PF: predicated region fallthrough
CT: control target
= control target key end

     0   :  { %vm40_vm0 = vcmask 261120   ;;  %s467_s0 = inlined_call_operand.vmem [shape: f32[16,32], index: 0, kind: input, shape index: {}]   ;;  %s468_s1 = inlined_call_operand.vmem [shape: f32[128,32], index: 1, kind: input, shape index: {}]   ;;  %s469_s2 = inlined_call_operand.vmem [shape: f32[1,128], index: 2, kind: input, shape index: {}]   ;;  %s470_s3 = inlined_call_operand.hbm [shape: f32[16,128], index: 3, kind: output, shape index: {}]  }
   0x1   :  { %v17_v0 = vld [vmem:[%s468_s1] sm:$0xff]  ;;  %v18_v1 = vld [vmem:[%s468_s1 + $0x8] sm:$0xff]  ;;  %v19_v2 = vld [vmem:[%s468_s1 + $0x10] sm:$0xff] }
   0x2   :  { %v260_v3 = vpack.c.bf16 %v18_v1, %v17_v0  ;;  %vm369_vm1 = vmpackc.low %vm40_vm0, %vm40_vm0  ;;  %v20_v5 = vld [vmem:[%s468_s1 + $0x18] sm:$0xff]  ;;  %v15_v7 = vld [vmem:[%s467_s0] sm:$0xff] }
   0x3   :  { %v266_v6 = vpack.c.bf16 %v20_v5, %v19_v2  ;;  %v21_v8 = vld [vmem:[%s468_s1 + $0x20] sm:$0xff]  ;;  %v22_v9 = vld [vmem:[%s468_s1 + $0x28] sm:$0xff]  ;;  %257 = vmatprep.mubr.msk.f32.mxu0 %vm40_vm0, %v15_v7 }
   0x4   :  { %262 = vmatprep.subr.msk.bf16.mxu0 %vm369_vm1, %v260_v3 }
   0x5   :  { %265 = vmatpush3.bf16.xpose.msk.msra.mxu0 %vm369_vm1, %v260_v3 }
   0x6   :  { %268 = vmatprep.subr.msk.bf16.mxu0 %vm369_vm1, %v266_v6 }
   0x7   :  { %8 = vsyncpa [#allocation3], 0  ;;  %v272_v10 = vpack.c.bf16 %v22_v9, %v21_v8  ;;  %v23_v11 = vld [vmem:[%s468_s1 + $0x30] sm:$0xff]  ;;  %v24_v12 = vld [vmem:[%s468_s1 + $0x38] sm:$0xff] }
   0x8   :  { %v278_v13 = vpack.c.bf16 %v24_v12, %v23_v11  ;;  %v25_v14 = vld [vmem:[%s468_s1 + $0x40] sm:$0xff]  ;;  %v26_v15 = vld [vmem:[%s468_s1 + $0x48] sm:$0xff]  ;;  %v27_v17 = vld [vmem:[%s468_s1 + $0x50] sm:$0xff] }
   0x9   :  { %v284_v16 = vpack.c.bf16 %v26_v15, %v25_v14  ;;  %v28_v18 = vld [vmem:[%s468_s1 + $0x58] sm:$0xff]  ;;  %v29_v20 = vld [vmem:[%s468_s1 + $0x60] sm:$0xff]  ;;  %v30_v21 = vld [vmem:[%s468_s1 + $0x68] sm:$0xff] }
   0xa   :  { %v290_v19 = vpack.c.bf16 %v28_v18, %v27_v17  ;;  %v296_v22 = vpack.c.bf16 %v30_v21, %v29_v20  ;;  %v31_v23 = vld [vmem:[%s468_s1 + $0x70] sm:$0xff]  ;;  %v32_v24 = vld [vmem:[%s468_s1 + $0x78] sm:$0xff]  ;;  %v16_v26 = vld [vmem:[%s467_s0 + $0x8] sm:$0xff]  ;;  %s335_s1 = smov [#allocation2]  }
   0xb   :  { %v302_v25 = vpack.c.bf16 %v32_v24, %v31_v23  ;;  %v188_v27 = vld [vmem:[%s469_s2] ss:$0 sm:$0xff]  ;;  %s177_s23 = sshll.u32 %s335_s1, 4  ;;  %s178_s23 = int_to_ptr.vmem [resolvable:$true] %s177_s23 }
   0xc   :  { %s311_s24 = scalar_lea.vmem %s178_s23, 256  ;;  %p316_p1 = scmp.lt.s32.totalorder %s178_s23, %s178_s23 }
   0xd   :  { %271 = vmatpush3.bf16.xpose.msk.msra.mxu0 %vm369_vm1, %v266_v6  ;;  %p312_p0 = scmp.ne.s32.totalorder %s178_s23, %s311_s24  ;;  %p317_p2 = scmp.lt.s32.totalorder %s311_s24, %s311_s24 }
   0xe   :  { %274 = vmatprep.subr.msk.bf16.mxu0 %vm369_vm1, %v272_v10 }
   0xf   :  { %p318_p3 = por %p317_p2, %p316_p1 }
  0x11   :  { %p319_p4 = pnand %p318_p3, %p312_p0 }
  0x15   :  { %277 = vmatpush3.bf16.xpose.msk.msra.mxu0 %vm369_vm1, %v272_v10 }
  0x16   :  { %280 = vmatprep.subr.msk.bf16.mxu0 %vm369_vm1, %v278_v13 }
  0x1d   :  { %283 = vmatpush3.bf16.xpose.msk.msra.mxu0 %vm369_vm1, %v278_v13 }
  0x1e   :  { %286 = vmatprep.subr.msk.bf16.mxu0 %vm369_vm1, %v284_v16 }
  0x25   :  { %289 = vmatpush3.bf16.xpose.msk.msra.mxu0 %vm369_vm1, %v284_v16 }
  0x26   :  { %292 = vmatprep.subr.msk.bf16.mxu0 %vm369_vm1, %v290_v19 }
  0x2d   :  { %295 = vmatpush3.bf16.xpose.msk.msra.mxu0 %vm369_vm1, %v290_v19 }
  0x2e   :  { %298 = vmatprep.subr.msk.bf16.mxu0 %vm369_vm1, %v296_v22 }
  0x35   :  { %301 = vmatpush3.bf16.xpose.msk.msra.mxu0 %vm369_vm1, %v296_v22 }
  0x36   :  { %304 = vmatprep.subr.msk.bf16.mxu0 %vm369_vm1, %v302_v25 }
  0x3d   :  { %307 = vmatpush3.bf16.xpose.msk.msra.mxu0 %vm369_vm1, %v302_v25 }
  0x44   :  { %258 = vmatmul.mubr.msk.f32.vlgmr.msra.gmra.mrb[0].mxu0 %vm40_vm0, %v16_v26 }
 0x117   :  { %v259_v28 = vpop.f32.mrb[0].mxu0 }
 0x118   :  { %v167_v29 = vadd.f32 %v259_v28, %v188_v27  ;;  %v161_v30 = vpop.f32.mrb[1].mxu0 }
 0x119   :  { %v162_v31 = vadd.f32 %v188_v27, %v161_v30 }
 0x11a   :  { %171 = vst [vmem:[#allocation2 + $0x8] sm:$0xff] %v167_v29 }
 0x11b   :  { %170 = vst [vmem:[#allocation2] sm:$0xff] %v162_v31 }
 0x11c   :  { %322 = shalt.err (!%p319_p4)
}
 0x11d   :  { %s323_s2 = scalar_lea.hbm %s470_s3, 256 }
 0x11e   :  { %p324_p5 = scmp.ne.s32.totalorder %s470_s3, %s323_s2  ;;  %p327_p6 = scmp.lt.u32.totalorder %s323_s2, %s470_s3 }
 0x120   :  { %p329_p7 = pnand %p327_p6, %p324_p5 }
 0x122   :  { %332 = shalt.err (!%p329_p7)
}
 0x123   :  { %s336_s30 = smov 128   ;;  %s337_s4 = smov 8  }
 0x124   :  { %183 = dma.vmem_to_hbm [thread:$0]  %s178_s23, 256, %s470_s3, [#allocation3], %s336_s30, %s336_s30, %s337_s4  }
 0x125   :  { %333 = dma.done.wait [#allocation3], 256  }
 0x126   :  { %334 = vsyncadd [#allocation3], 4294967040 }
 0x127   :  { %187 = vsyncpa [#allocation3], 1 }

</bundles_post_ra>
